<compile_context>
chip_gen: v7x
topology: tpu7x:2x2x1
jax: 0.10.0
libtpu: 0.0.40
codegen_flags: <defaults>
</compile_context>

<pallas_src>
import functools

import jax
import jax.numpy as jnp
from jax.experimental import pallas as pl
from jax.experimental.pallas import tpu as pltpu


def _round_up(x, m):
    return (x + m - 1) // m * m


def _choose_batch_tile(batch, batch_tile, min_grid_steps):
    full = _round_up(batch, 8)
    tb = min(batch_tile, full)
    if min_grid_steps > 1:
        split = _round_up(pl.cdiv(batch, min_grid_steps), 8)
        # Prefer >= min_grid_steps grid steps (v7x megacore) but never shrink below one full
        # 128-row MXU tile unless the batch itself is smaller than that (v5e/v6e occupancy).
        tb = min(tb, max(split, min(128, full)))
    return max(tb, 8)


def ffnn_tagger_kernel(idx_ref, weff_ref, b1_ref, w2_ref, b2_ref, out_ref, *,
                       vocab_size, activation):
    # idx_ref : (TB, W)        int32 token indices for this batch tile
    # weff_ref: (K_pad, H_pad) folded embedding@fc1 weight (VMEM resident)
    # b1_ref  : (1, H_pad)     fc1 bias (f32, zero-padded)
    # w2_ref  : (H_pad, O_pad) fc2 weight (zero-padded, lane dense)
    # b2_ref  : (1, O_pad)     fc2 bias (f32, zero-padded)
    # out_ref : (TB, O_pad)    lane-dense output tile
    idx = idx_ref[...]
    tb, w_ctx = idx.shape
    k_pad = weff_ref.shape[0]

    # Stacked one-hot over the padded (window * vocab) contraction axis:
    #   one_hot[b, w*V + idx[b, w]] = 1   only for valid ids 0 <= idx[b, w] < V.
    lane = jax.lax.broadcasted_iota(jnp.int32, (tb, k_pad), 1)
    hot = jnp.zeros((tb, k_pad), jnp.bool_)
    for w in range(w_ctx):                       # W is tiny & static (pre + suc + 1)
        col = idx[:, w:w + 1]
        valid = (col >= 0) & (col < vocab_size)  # OOV / pad ids -> all-zero row
        hot = hot | ((lane == col + w * vocab_size) & valid)
    one_hot = hot.astype(weff_ref.dtype)

    # Embedding gather + fc1 as one MXU matmul against the folded weight (f32 accumulation).
    h = jnp.dot(one_hot, weff_ref[...], preferred_element_type=jnp.float32)
    h = h + b1_ref[...]
    h = jnp.maximum(h, 0.0) if activation == "relu" else jnp.tanh(h)

    # fc2 (hidden and output dims pre-padded to lane-dense multiples of 128).
    out = jnp.dot(h.astype(w2_ref.dtype), w2_ref[...],
                  preferred_element_type=jnp.float32) + b2_ref[...]
    out_ref[...] = out.astype(out_ref.dtype)


def prepare_ffnn_tagger_weights(emb, w1, b1, w2, b2, *, weight_dtype=jnp.bfloat16):
    """One-time weight prep: fold the embedding into fc1, pad all matmul dims, cast.

    Call once per weight update and reuse across forward calls (keeps the O(W*V*E*H) fold
    and the pad/scatter HLOs off the per-step critical path).
      emb: (V, E); w1: (W*E, H); b1: (1, H) or (H,); w2: (H, O); b2: (1, O) or (O,).
    """
    V, E = emb.shape
    WE, H = w1.shape
    W = WE // E
    assert W * E == WE, "w1 first dim must be window * embedding_dim"
    O = w2.shape[-1]

    k_pad = _round_up(W * V, 128)
    h_pad = _round_up(max(H, 1), 128)
    o_pad = _round_up(max(O, 1), 128)

    # fc1(concat_w emb[idx_w]) == b1 + sum_w one_hot(idx_w) @ (emb @ w1[w*E:(w+1)*E, :])
    w_eff = jnp.einsum(
        "ve,weh->wvh",
        emb.astype(jnp.float32),
        w1.astype(jnp.float32).reshape(W, E, H),
        precision=jax.lax.Precision.HIGHEST,
    ).reshape(W * V, H)

    w_eff_p = jnp.zeros((k_pad, h_pad), jnp.float32).at[:W * V, :H].set(w_eff)
    w2_p = jnp.zeros((h_pad, o_pad), jnp.float32).at[:H, :O].set(w2.astype(jnp.float32))
    b1_p = jnp.zeros((1, h_pad), jnp.float32).at[:, :H].set(
        b1.reshape(1, H).astype(jnp.float32))
    b2_p = jnp.zeros((1, o_pad), jnp.float32).at[:, :O].set(
        b2.reshape(1, O).astype(jnp.float32))

    return {
        "w_eff": w_eff_p.astype(weight_dtype),
        "b1": b1_p,
        "w2": w2_p.astype(weight_dtype),
        "b2": b2_p,
        "vocab_size": V,
        "window": W,
        "out_dim": O,
    }


def ffnn_tagger_apply(prepared, x_idx, *, batch_tile=256, min_grid_steps=2,
                      activation="relu"):
    """Forward pass of FFNNTagger with pre-folded weights. Returns (B, O) float32."""
    B, W = x_idx.shape
    if W != prepared["window"]:
        raise ValueError(f"context window mismatch: got {W}, prepared {prepared['window']}")
    w_eff, b1, w2, b2 = prepared["w_eff"], prepared["b1"], prepared["w2"], prepared["b2"]
    k_pad, h_pad = w_eff.shape
    o_pad = w2.shape[1]
    V = prepared["vocab_size"]
    O = prepared["out_dim"]

    tb = _choose_batch_tile(B, batch_tile, min_grid_steps)
    b_pad = _round_up(B, tb)
    # Pad the batch with id -1: the in-kernel validity guard turns those rows into all-zero
    # one-hots; the rows are sliced off below anyway.
    idx = jnp.full((b_pad, W), -1, jnp.int32).at[:B].set(x_idx.astype(jnp.int32))
    grid = (b_pad // tb,)

    # Explicit VMEM budget: weights (x2 covers the double-buffered fallback), double-buffered
    # idx/out tiles, plus headroom; clamped to v7x's 64 MiB physical VMEM.
    wbytes = jnp.dtype(w_eff.dtype).itemsize
    weight_bytes = k_pad * h_pad * wbytes + h_pad * o_pad * wbytes + (h_pad + o_pad) * 4
    tile_bytes = 2 * (tb * W * 4 + tb * o_pad * 4)
    vmem_limit = int(min(max(2 * weight_bytes + tile_bytes + (4 << 20), 16 << 20), 64 << 20))

    kernel = functools.partial(ffnn_tagger_kernel, vocab_size=V, activation=activation)

    def run(single_buffer_weights):
        weight_kwargs = (
            dict(pipeline_mode=pl.Buffered(1)) if single_buffer_weights else {})

        def resident(shape):
            # Constant index map -> block stays VMEM-resident across the whole batch grid.
            return pl.BlockSpec(shape, lambda i: (0, 0), **weight_kwargs)

        return pl.pallas_call(
            kernel,
            out_shape=jax.ShapeDtypeStruct((b_pad, o_pad), jnp.float32),
            grid=grid,
            in_specs=[
                pl.BlockSpec((tb, W), lambda i: (i, 0)),   # token indices (per batch tile)
                resident((k_pad, h_pad)),                  # folded emb@fc1 weight
                resident((1, h_pad)),                      # fc1 bias
                resident((h_pad, o_pad)),                  # fc2 weight (lane padded)
                resident((1, o_pad)),                      # fc2 bias (lane padded)
            ],
            out_specs=pl.BlockSpec((tb, o_pad), lambda i: (i, 0)),
            compiler_params=pltpu.CompilerParams(
                dimension_semantics=("parallel",),         # shards batch across TCs on v7x
                vmem_limit_bytes=vmem_limit),
        )(idx, w_eff, b1, w2, b2)

    try:
        out = run(single_buffer_weights=True)
    except Exception:
        # Fallback for toolchains where pl.Buffered(1) on the outer pipeline is rejected;
        # identical kernel, just default double-buffered weight blocks.
        out = run(single_buffer_weights=False)

    return out[:B, :O]


def ffnn_tagger_forward(x_idx, emb, w1, b1, w2, b2, *, weight_dtype=jnp.bfloat16,
                        activation="relu", batch_tile=256, min_grid_steps=2):
    """Convenience wrapper.  Prefer prepare_ffnn_tagger_weights() + ffnn_tagger_apply()
    so the fold/pad is not re-done on every forward call."""
    prepared = prepare_ffnn_tagger_weights(emb, w1, b1, w2, b2, weight_dtype=weight_dtype)
    return ffnn_tagger_apply(prepared, x_idx, batch_tile=batch_tile,
                             min_grid_steps=min_grid_steps, activation=activation)


def reference_forward(x_idx, emb, w1, b1, w2, b2):
    # Pure-JAX mirror of the PyTorch forward (for correctness checks).
    e = emb[x_idx]                                   # (B, W, E)
    e = e.reshape(e.shape[0], -1)                    # (B, W*E)
    h = jnp.maximum(e @ w1 + b1, 0.0)                # fc1 + ReLU
    return h @ w2 + b2                               # fc2


if __name__ == "__main__":
    # Small, deterministic configuration consistent with FFNNTagger defaults.
    vocab_size = 30
    embedding_dim = 100
    hidden_dim = 50
    output_dim = 1
    pre, suc = 1, 1
    window = pre + suc + 1
    batch = 8

    key = jax.random.PRNGKey(0)
    k_idx, k_emb, k_w1, k_b1, k_w2, k_b2 = jax.random.split(key, 6)

    x_idx = jax.random.randint(k_idx, (batch, window), 0, vocab_size, dtype=jnp.int32)
    emb = jax.random.normal(k_emb, (vocab_size, embedding_dim), dtype=jnp.float32)
    fan1 = window * embedding_dim
    w1 = jax.random.uniform(k_w1, (fan1, hidden_dim), jnp.float32,
                            minval=-1.0, maxval=1.0) / jnp.sqrt(fan1)
    b1 = jax.random.uniform(k_b1, (1, hidden_dim), jnp.float32,
                            minval=-1.0, maxval=1.0) / jnp.sqrt(fan1)
    w2 = jax.random.uniform(k_w2, (hidden_dim, output_dim), jnp.float32,
                            minval=-1.0, maxval=1.0) / jnp.sqrt(hidden_dim)
    b2 = jax.random.uniform(k_b2, (1, output_dim), jnp.float32,
                            minval=-1.0, maxval=1.0) / jnp.sqrt(hidden_dim)

    ref = reference_forward(x_idx, emb, w1, b1, w2, b2)

    # f32 weight path: bit-for-bit comparable against the reference within tight tolerance.
    prep_f32 = prepare_ffnn_tagger_weights(emb, w1, b1, w2, b2, weight_dtype=jnp.float32)
    out_f32 = jax.block_until_ready(ffnn_tagger_apply(prep_f32, x_idx))
    assert out_f32.shape == (batch, output_dim)
    assert jnp.allclose(out_f32, ref, atol=1e-4, rtol=1e-4), "f32 kernel mismatch vs reference"

    # Default bf16 weight path: weights are rounded to bf16, so use a looser tolerance.
    prep_bf16 = prepare_ffnn_tagger_weights(emb, w1, b1, w2, b2)   # weight_dtype=bf16
    out_bf16 = jax.block_until_ready(ffnn_tagger_apply(prep_bf16, x_idx))
    assert out_bf16.shape == (batch, output_dim)
    assert jnp.allclose(out_bf16, ref, atol=5e-2, rtol=5e-2), "bf16 kernel mismatch vs reference"

    print("KERNEL_OK")
</pallas_src>

<mosaic_0001>
module attributes {stable_mosaic.version = 11 : i64} {
  func.func @ffnn_tagger_kernel(%arg0: i32, %arg1: memref<8x3xi32, #tpu.memory_space<vmem>>, %arg2: memref<128x128xf32, #tpu.memory_space<vmem>>, %arg3: memref<1x128xf32, #tpu.memory_space<vmem>>, %arg4: memref<128x128xf32, #tpu.memory_space<vmem>>, %arg5: memref<1x128xf32, #tpu.memory_space<vmem>>, %arg6: memref<8x128xf32, #tpu.memory_space<vmem>>) attributes {dimension_semantics = [#tpu.dimension_semantics<parallel>], iteration_bounds = array<i64: 1>, scalar_prefetch = 0 : i64, scratch_operands = 0 : i64, tpu.core_type = #tpu.core_type<tc>, window_params = [{transform_indices = @transform_0, window_bounds = array<i64: 8, 3>}, {pipeline_mode = #tpu.pipeline_mode<synchronous>, transform_indices = @transform_1, window_bounds = array<i64: 128, 128>}, {pipeline_mode = #tpu.pipeline_mode<synchronous>, transform_indices = @transform_2, window_bounds = array<i64: 1, 128>}, {pipeline_mode = #tpu.pipeline_mode<synchronous>, transform_indices = @transform_3, window_bounds = array<i64: 128, 128>}, {pipeline_mode = #tpu.pipeline_mode<synchronous>, transform_indices = @transform_4, window_bounds = array<i64: 1, 128>}, {transform_indices = @transform_5, window_bounds = array<i64: 8, 128>}]} {
    %c0 = arith.constant 0 : index
    %c0_0 = arith.constant 0 : index
    %0 = vector.load %arg1[%c0, %c0_0] : memref<8x3xi32, #tpu.memory_space<vmem>>, vector<8x3xi32>
    %1 = tpu.iota {dimensions = array<i32: 1>} : vector<8x128xi32>
    %false = arith.constant false
    %2 = vector.broadcast %false : i1 to vector<8x128xi1>
    %3 = vector.extract_strided_slice %0 {offsets = [0, 0], sizes = [8, 1], strides = [1, 1]} : vector<8x3xi32> to vector<8x1xi32>
    %c0_i32 = arith.constant 0 : i32
    %4 = vector.broadcast %c0_i32 : i32 to vector<8x1xi32>
    %5 = arith.cmpi sge, %3, %4 : vector<8x1xi32>
    %c30_i32 = arith.constant 30 : i32
    %6 = vector.broadcast %c30_i32 : i32 to vector<8x1xi32>
    %7 = arith.cmpi slt, %3, %6 : vector<8x1xi32>
    %8 = arith.andi %5, %7 : vector<8x1xi1>
    %c0_i32_1 = arith.constant 0 : i32
    %9 = vector.broadcast %c0_i32_1 : i32 to vector<8x1xi32>
    %10 = arith.addi %3, %9 : vector<8x1xi32>
    %11 = vector.broadcast %10 : vector<8x1xi32> to vector<8x128xi32>
    %12 = arith.cmpi eq, %1, %11 : vector<8x128xi32>
    %13 = vector.broadcast %8 : vector<8x1xi1> to vector<8x128xi1>
    %14 = arith.andi %12, %13 : vector<8x128xi1>
    %15 = arith.ori %2, %14 : vector<8x128xi1>
    %16 = vector.extract_strided_slice %0 {offsets = [0, 1], sizes = [8, 1], strides = [1, 1]} : vector<8x3xi32> to vector<8x1xi32>
    %c0_i32_2 = arith.constant 0 : i32
    %17 = vector.broadcast %c0_i32_2 : i32 to vector<8x1xi32>
    %18 = arith.cmpi sge, %16, %17 : vector<8x1xi32>
    %c30_i32_3 = arith.constant 30 : i32
    %19 = vector.broadcast %c30_i32_3 : i32 to vector<8x1xi32>
    %20 = arith.cmpi slt, %16, %19 : vector<8x1xi32>
    %21 = arith.andi %18, %20 : vector<8x1xi1>
    %c30_i32_4 = arith.constant 30 : i32
    %22 = vector.broadcast %c30_i32_4 : i32 to vector<8x1xi32>
    %23 = arith.addi %16, %22 : vector<8x1xi32>
    %24 = vector.broadcast %23 : vector<8x1xi32> to vector<8x128xi32>
    %25 = arith.cmpi eq, %1, %24 : vector<8x128xi32>
    %26 = vector.broadcast %21 : vector<8x1xi1> to vector<8x128xi1>
    %27 = arith.andi %25, %26 : vector<8x128xi1>
    %28 = arith.ori %15, %27 : vector<8x128xi1>
    %29 = vector.extract_strided_slice %0 {offsets = [0, 2], sizes = [8, 1], strides = [1, 1]} : vector<8x3xi32> to vector<8x1xi32>
    %c0_i32_5 = arith.constant 0 : i32
    %30 = vector.broadcast %c0_i32_5 : i32 to vector<8x1xi32>
    %31 = arith.cmpi sge, %29, %30 : vector<8x1xi32>
    %c30_i32_6 = arith.constant 30 : i32
    %32 = vector.broadcast %c30_i32_6 : i32 to vector<8x1xi32>
    %33 = arith.cmpi slt, %29, %32 : vector<8x1xi32>
    %34 = arith.andi %31, %33 : vector<8x1xi1>
    %c60_i32 = arith.constant 60 : i32
    %35 = vector.broadcast %c60_i32 : i32 to vector<8x1xi32>
    %36 = arith.addi %29, %35 : vector<8x1xi32>
    %37 = vector.broadcast %36 : vector<8x1xi32> to vector<8x128xi32>
    %38 = arith.cmpi eq, %1, %37 : vector<8x128xi32>
    %39 = vector.broadcast %34 : vector<8x1xi1> to vector<8x128xi1>
    %40 = arith.andi %38, %39 : vector<8x128xi1>
    %41 = arith.ori %28, %40 : vector<8x128xi1>
    %42 = arith.extui %41 : vector<8x128xi1> to vector<8x128xi32>
    %43 = arith.sitofp %42 : vector<8x128xi32> to vector<8x128xf32>
    %c0_7 = arith.constant 0 : index
    %c0_8 = arith.constant 0 : index
    %44 = vector.load %arg2[%c0_7, %c0_8] : memref<128x128xf32, #tpu.memory_space<vmem>>, vector<128x128xf32>
    %cst = arith.constant dense<0.000000e+00> : vector<8x128xf32>
    %45 = tpu.matmul %43, %44, %cst {dimension_numbers = #tpu.dot_dimension_numbers<[1], [0], [0], [1], [0, 0, 1, 1], [], []>} : vector<8x128xf32>, vector<128x128xf32>, vector<8x128xf32> -> vector<8x128xf32>
    %c0_9 = arith.constant 0 : index
    %c0_10 = arith.constant 0 : index
    %46 = vector.load %arg3[%c0_9, %c0_10] : memref<1x128xf32, #tpu.memory_space<vmem>>, vector<1x128xf32>
    %47 = vector.broadcast %46 : vector<1x128xf32> to vector<8x128xf32>
    %48 = arith.addf %45, %47 : vector<8x128xf32>
    %cst_11 = arith.constant 0.000000e+00 : f32
    %49 = vector.broadcast %cst_11 : f32 to vector<8x128xf32>
    %50 = arith.maximumf %48, %49 : vector<8x128xf32>
    %c0_12 = arith.constant 0 : index
    %c0_13 = arith.constant 0 : index
    %51 = vector.load %arg4[%c0_12, %c0_13] : memref<128x128xf32, #tpu.memory_space<vmem>>, vector<128x128xf32>
    %cst_14 = arith.constant dense<0.000000e+00> : vector<8x128xf32>
    %52 = tpu.matmul %50, %51, %cst_14 {dimension_numbers = #tpu.dot_dimension_numbers<[1], [0], [0], [1], [0, 0, 1, 1], [], []>} : vector<8x128xf32>, vector<128x128xf32>, vector<8x128xf32> -> vector<8x128xf32>
    %c0_15 = arith.constant 0 : index
    %c0_16 = arith.constant 0 : index
    %53 = vector.load %arg5[%c0_15, %c0_16] : memref<1x128xf32, #tpu.memory_space<vmem>>, vector<1x128xf32>
    %54 = vector.broadcast %53 : vector<1x128xf32> to vector<8x128xf32>
    %55 = arith.addf %52, %54 : vector<8x128xf32>
    %c0_17 = arith.constant 0 : index
    %c0_18 = arith.constant 0 : index
    %56 = vector.load %arg6[%c0_17, %c0_18] : memref<8x128xf32, #tpu.memory_space<vmem>>, vector<8x128xf32>
    tpu.vector_store %arg6[%c0_17, %c0_18], %55 {strides = array<i32>} : memref<8x128xf32, #tpu.memory_space<vmem>>, vector<8x128xf32>,
    return
  }
  func.func @transform_0(%arg0: i32) -> (i32, i32) {
    %c0_i32 = arith.constant 0 : i32
    %c0_i32_0 = arith.constant 0 : i32
    return %arg0, %c0_i32 : i32, i32
  }
  func.func @transform_1(%arg0: i32) -> (i32, i32) {
    %c0_i32 = arith.constant 0 : i32
    %c0_i32_0 = arith.constant 0 : i32
    %c0_i32_1 = arith.constant 0 : i32
    return %c0_i32, %c0_i32_0 : i32, i32
  }
  func.func @transform_2(%arg0: i32) -> (i32, i32) {
    %c0_i32 = arith.constant 0 : i32
    %c0_i32_0 = arith.constant 0 : i32
    %c0_i32_1 = arith.constant 0 : i32
    return %c0_i32, %c0_i32_0 : i32, i32
  }
  func.func @transform_3(%arg0: i32) -> (i32, i32) {
    %c0_i32 = arith.constant 0 : i32
    %c0_i32_0 = arith.constant 0 : i32
    %c0_i32_1 = arith.constant 0 : i32
    return %c0_i32, %c0_i32_0 : i32, i32
  }
  func.func @transform_4(%arg0: i32) -> (i32, i32) {
    %c0_i32 = arith.constant 0 : i32
    %c0_i32_0 = arith.constant 0 : i32
    %c0_i32_1 = arith.constant 0 : i32
    return %c0_i32, %c0_i32_0 : i32, i32
  }
  func.func @transform_5(%arg0: i32) -> (i32, i32) {
    %c0_i32 = arith.constant 0 : i32
    %c0_i32_0 = arith.constant 0 : i32
    return %arg0, %c0_i32 : i32, i32
  }
}

module attributes {stable_mosaic.version = 11 : i64} {
  func.func @ffnn_tagger_kernel(%arg0: i32, %arg1: memref<8x3xi32, #tpu.memory_space<vmem>>, %arg2: memref<128x128xf32, #tpu.memory_space<vmem>>, %arg3: memref<1x128xf32, #tpu.memory_space<vmem>>, %arg4: memref<128x128xf32, #tpu.memory_space<vmem>>, %arg5: memref<1x128xf32, #tpu.memory_space<vmem>>, %arg6: memref<8x128xf32, #tpu.memory_space<vmem>>) attributes {dimension_semantics = [#tpu.dimension_semantics<parallel>], iteration_bounds = array<i64: 1>, scalar_prefetch = 0 : i64, scratch_operands = 0 : i64, tpu.core_type = #tpu.core_type<tc>, window_params = [{transform_indices = @transform_0, window_bounds = array<i64: 8, 3>}, {pipeline_mode = #tpu.pipeline_mode<synchronous>, transform_indices = @transform_1, window_bounds = array<i64: 128, 128>}, {pipeline_mode = #tpu.pipeline_mode<synchronous>, transform_indices = @transform_2, window_bounds = array<i64: 1, 128>}, {pipeline_mode = #tpu.pipeline_mode<synchronous>, transform_indices = @transform_3, window_bounds = array<i64: 128, 128>}, {pipeline_mode = #tpu.pipeline_mode<synchronous>, transform_indices = @transform_4, window_bounds = array<i64: 1, 128>}, {transform_indices = @transform_5, window_bounds = array<i64: 8, 128>}]} {
    %c0 = arith.constant 0 : index
    %c0_0 = arith.constant 0 : index
    %0 = vector.load %arg1[%c0, %c0_0] : memref<8x3xi32, #tpu.memory_space<vmem>>, vector<8x3xi32>
    %1 = tpu.iota {dimensions = array<i32: 1>} : vector<8x128xi32>
    %false = arith.constant false
    %2 = vector.broadcast %false : i1 to vector<8x128xi1>
    %3 = vector.extract_strided_slice %0 {offsets = [0, 0], sizes = [8, 1], strides = [1, 1]} : vector<8x3xi32> to vector<8x1xi32>
    %c0_i32 = arith.constant 0 : i32
    %4 = vector.broadcast %c0_i32 : i32 to vector<8x1xi32>
    %5 = arith.cmpi sge, %3, %4 : vector<8x1xi32>
    %c30_i32 = arith.constant 30 : i32
    %6 = vector.broadcast %c30_i32 : i32 to vector<8x1xi32>
    %7 = arith.cmpi slt, %3, %6 : vector<8x1xi32>
    %8 = arith.andi %5, %7 : vector<8x1xi1>
    %c0_i32_1 = arith.constant 0 : i32
    %9 = vector.broadcast %c0_i32_1 : i32 to vector<8x1xi32>
    %10 = arith.addi %3, %9 : vector<8x1xi32>
    %11 = vector.broadcast %10 : vector<8x1xi32> to vector<8x128xi32>
    %12 = arith.cmpi eq, %1, %11 : vector<8x128xi32>
    %13 = vector.broadcast %8 : vector<8x1xi1> to vector<8x128xi1>
    %14 = arith.andi %12, %13 : vector<8x128xi1>
    %15 = arith.ori %2, %14 : vector<8x128xi1>
    %16 = vector.extract_strided_slice %0 {offsets = [0, 1], sizes = [8, 1], strides = [1, 1]} : vector<8x3xi32> to vector<8x1xi32>
    %c0_i32_2 = arith.constant 0 : i32
    %17 = vector.broadcast %c0_i32_2 : i32 to vector<8x1xi32>
    %18 = arith.cmpi sge, %16, %17 : vector<8x1xi32>
    %c30_i32_3 = arith.constant 30 : i32
    %19 = vector.broadcast %c30_i32_3 : i32 to vector<8x1xi32>
    %20 = arith.cmpi slt, %16, %19 : vector<8x1xi32>
    %21 = arith.andi %18, %20 : vector<8x1xi1>
    %c30_i32_4 = arith.constant 30 : i32
    %22 = vector.broadcast %c30_i32_4 : i32 to vector<8x1xi32>
    %23 = arith.addi %16, %22 : vector<8x1xi32>
    %24 = vector.broadcast %23 : vector<8x1xi32> to vector<8x128xi32>
    %25 = arith.cmpi eq, %1, %24 : vector<8x128xi32>
    %26 = vector.broadcast %21 : vector<8x1xi1> to vector<8x128xi1>
    %27 = arith.andi %25, %26 : vector<8x128xi1>
    %28 = arith.ori %15, %27 : vector<8x128xi1>
    %29 = vector.extract_strided_slice %0 {offsets = [0, 2], sizes = [8, 1], strides = [1, 1]} : vector<8x3xi32> to vector<8x1xi32>
    %c0_i32_5 = arith.constant 0 : i32
    %30 = vector.broadcast %c0_i32_5 : i32 to vector<8x1xi32>
    %31 = arith.cmpi sge, %29, %30 : vector<8x1xi32>
    %c30_i32_6 = arith.constant 30 : i32
    %32 = vector.broadcast %c30_i32_6 : i32 to vector<8x1xi32>
    %33 = arith.cmpi slt, %29, %32 : vector<8x1xi32>
    %34 = arith.andi %31, %33 : vector<8x1xi1>
    %c60_i32 = arith.constant 60 : i32
    %35 = vector.broadcast %c60_i32 : i32 to vector<8x1xi32>
    %36 = arith.addi %29, %35 : vector<8x1xi32>
    %37 = vector.broadcast %36 : vector<8x1xi32> to vector<8x128xi32>
    %38 = arith.cmpi eq, %1, %37 : vector<8x128xi32>
    %39 = vector.broadcast %34 : vector<8x1xi1> to vector<8x128xi1>
    %40 = arith.andi %38, %39 : vector<8x128xi1>
    %41 = arith.ori %28, %40 : vector<8x128xi1>
    %42 = arith.extui %41 : vector<8x128xi1> to vector<8x128xi32>
    %43 = arith.sitofp %42 : vector<8x128xi32> to vector<8x128xf32>
    %c0_7 = arith.constant 0 : index
    %c0_8 = arith.constant 0 : index
    %44 = vector.load %arg2[%c0_7, %c0_8] : memref<128x128xf32, #tpu.memory_space<vmem>>, vector<128x128xf32>
    %cst = arith.constant dense<0.000000e+00> : vector<8x128xf32>
    %45 = tpu.matmul %43, %44, %cst {dimension_numbers = #tpu.dot_dimension_numbers<[1], [0], [0], [1], [0, 0, 1, 1], [], []>} : vector<8x128xf32>, vector<128x128xf32>, vector<8x128xf32> -> vector<8x128xf32>
    %c0_9 = arith.constant 0 : index
    %c0_10 = arith.constant 0 : index
    %46 = vector.load %arg3[%c0_9, %c0_10] : memref<1x128xf32, #tpu.memory_space<vmem>>, vector<1x128xf32>
    %47 = vector.broadcast %46 : vector<1x128xf32> to vector<8x128xf32>
    %48 = arith.addf %45, %47 : vector<8x128xf32>
    %cst_11 = arith.constant 0.000000e+00 : f32
    %49 = vector.broadcast %cst_11 : f32 to vector<8x128xf32>
    %50 = arith.maximumf %48, %49 : vector<8x128xf32>
    %c0_12 = arith.constant 0 : index
    %c0_13 = arith.constant 0 : index
    %51 = vector.load %arg4[%c0_12, %c0_13] : memref<128x128xf32, #tpu.memory_space<vmem>>, vector<128x128xf32>
    %cst_14 = arith.constant dense<0.000000e+00> : vector<8x128xf32>
    %52 = tpu.matmul %50, %51, %cst_14 {dimension_numbers = #tpu.dot_dimension_numbers<[1], [0], [0], [1], [0, 0, 1, 1], [], []>} : vector<8x128xf32>, vector<128x128xf32>, vector<8x128xf32> -> vector<8x128xf32>
    %c0_15 = arith.constant 0 : index
    %c0_16 = arith.constant 0 : index
    %53 = vector.load %arg5[%c0_15, %c0_16] : memref<1x128xf32, #tpu.memory_space<vmem>>, vector<1x128xf32>
    %54 = vector.broadcast %53 : vector<1x128xf32> to vector<8x128xf32>
    %55 = arith.addf %52, %54 : vector<8x128xf32>
    %c0_17 = arith.constant 0 : index
    %c0_18 = arith.constant 0 : index
    %56 = vector.load %arg6[%c0_17, %c0_18] : memref<8x128xf32, #tpu.memory_space<vmem>>, vector<8x128xf32>
    tpu.vector_store %arg6[%c0_17, %c0_18], %55 {strides = array<i32>} : memref<8x128xf32, #tpu.memory_space<vmem>>, vector<8x128xf32>,
    return
  }
  func.func @transform_0(%arg0: i32) -> (i32, i32) {
    %c0_i32 = arith.constant 0 : i32
    %c0_i32_0 = arith.constant 0 : i32
    return %arg0, %c0_i32 : i32, i32
  }
  func.func @transform_1(%arg0: i32) -> (i32, i32) {
    %c0_i32 = arith.constant 0 : i32
    %c0_i32_0 = arith.constant 0 : i32
    %c0_i32_1 = arith.constant 0 : i32
    return %c0_i32, %c0_i32_0 : i32, i32
  }
  func.func @transform_2(%arg0: i32) -> (i32, i32) {
    %c0_i32 = arith.constant 0 : i32
    %c0_i32_0 = arith.constant 0 : i32
    %c0_i32_1 = arith.constant 0 : i32
    return %c0_i32, %c0_i32_0 : i32, i32
  }
  func.func @transform_3(%arg0: i32) -> (i32, i32) {
    %c0_i32 = arith.constant 0 : i32
    %c0_i32_0 = arith.constant 0 : i32
    %c0_i32_1 = arith.constant 0 : i32
    return %c0_i32, %c0_i32_0 : i32, i32
  }
  func.func @transform_4(%arg0: i32) -> (i32, i32) {
    %c0_i32 = arith.constant 0 : i32
    %c0_i32_0 = arith.constant 0 : i32
    %c0_i32_1 = arith.constant 0 : i32
    return %c0_i32, %c0_i32_0 : i32, i32
  }
  func.func @transform_5(%arg0: i32) -> (i32, i32) {
    %c0_i32 = arith.constant 0 : i32
    %c0_i32_0 = arith.constant 0 : i32
    return %arg0, %c0_i32 : i32, i32
  }
}

</mosaic_0001>

<bundles_post_ra>
// kernel: tpu_custom_call.1
= control target key start
LH: loop header
LB: loop body
LE: loop exit
PB: predicated region body
PF: predicated region fallthrough
CT: control target
= control target key end

     0   :  { %10 = vsyncpa [#allocation3], 0  ;;  %s640_s0 = inlined_call_operand.vmem [shape: s32[8,3], index: 0, kind: input, shape index: {}]   ;;  %s641_s1 = inlined_call_operand.hbm [shape: f32[128,128], index: 1, kind: input, shape index: {}]   ;;  %s642_s2 = inlined_call_operand.vmem [shape: f32[1,128], index: 2, kind: input, shape index: {}]   ;;  %s643_s3 = inlined_call_operand.hbm [shape: f32[128,128], index: 3, kind: input, shape index: {}]   ;;  %s644_s4 = inlined_call_operand.vmem [shape: f32[1,128], index: 4, kind: input, shape index: {}]   ;;  %s645_s5 = inlined_call_operand.hbm [shape: f32[8,128], index: 5, kind: output, shape index: {}]  }
   0x1   :  { %11 = vsyncpa [#allocation6], 0 }
   0x2   :  { %12 = vsyncpa [#allocation4], 0  ;;  %s537_s18 = smov [#allocation2]   ;;  %s465_s22 = scalar_lea.hbm %s641_s1, 2048 }
   0x3   :  { %s20_s19 = sshll.u32 %s537_s18, 4  ;;  %p466_p0 = scmp.ne.s32.totalorder %s641_s1, %s465_s22  ;;  %s21_s19 = int_to_ptr.vmem [resolvable:$true] %s20_s19 }
   0x4   :  { %p469_p1 = scmp.lt.u32.totalorder %s465_s22, %s641_s1 }
   0x6   :  { %p471_p2 = pnand %p469_p1, %p466_p0 }
   0x8   :  { %474 = shalt.err (!%p471_p2)
}
   0x9   :  { %s475_s27 = scalar_lea.vmem %s21_s19, 2048  ;;  %p480_p4 = scmp.lt.s32.totalorder %s21_s19, %s21_s19 }
   0xa   :  { %p476_p3 = scmp.ne.s32.totalorder %s21_s19, %s475_s27  ;;  %p481_p5 = scmp.lt.s32.totalorder %s475_s27, %s475_s27 }
   0xc   :  { %p482_p6 = por %p481_p5, %p480_p4 }
   0xe   :  { %p483_p7 = pnand %p482_p6, %p476_p3 }
  0x10   :  { %486 = shalt.err (!%p483_p7)
}
  0x11   :  { %s538_s28 = smov 128   ;;  %s539_s29 = smov 8  }
  0x12   :  { %26 = dma.hbm_to_vmem [thread:$0]  %s641_s1, 2048, %s21_s19, [#allocation3], %s538_s28, %s538_s28, %s539_s29  }
  0x13   :  { %s540_s7 = smov [#allocation5]   ;;  %s487_s11 = scalar_lea.hbm %s643_s3, 2048 }
  0x14   :  { %s34_s8 = sshll.u32 %s540_s7, 4  ;;  %p488_p8 = scmp.ne.s32.totalorder %s643_s3, %s487_s11  ;;  %s35_s8 = int_to_ptr.vmem [resolvable:$true] %s34_s8 }
  0x15   :  { %p491_p9 = scmp.lt.u32.totalorder %s487_s11, %s643_s3 }
  0x17   :  { %p493_p10 = pnand %p491_p9, %p488_p8 }
  0x19   :  { %496 = shalt.err (!%p493_p10)
}
  0x1a   :  { %s497_s16 = scalar_lea.vmem %s35_s8, 2048  ;;  %p502_p12 = scmp.lt.s32.totalorder %s35_s8, %s35_s8 }
  0x1b   :  { %p498_p11 = scmp.ne.s32.totalorder %s35_s8, %s497_s16  ;;  %p503_p13 = scmp.lt.s32.totalorder %s497_s16, %s497_s16 }
  0x1d   :  { %p504_p0 = por %p503_p13, %p502_p12 }
  0x1f   :  { %p505_p1 = pnand %p504_p0, %p498_p11 }
  0x21   :  { %508 = shalt.err (!%p505_p1)
}
  0x22   :  { %40 = dma.hbm_to_vmem [thread:$0]  %s643_s3, 2048, %s35_s8, [#allocation6], %s538_s28, %s538_s28, %s539_s29  }
  0x23   :  { %531 = dma.done.wait [#allocation3], 2048  }
  0x24   :  { %532 = vsyncadd [#allocation3], 4294965248 }
  0x25   :  { %533 = dma.done.wait [#allocation6], 2048  }
  0x26   :  { %534 = vsyncadd [#allocation6], 4294965248  ;;  %v541_v0 = vmov 0   ;;  %v542_v1 = vmov 1   ;;  %v543_v2 = vmov 0.0|0.0   ;;  %v49_v3 = vld [vmem:[%s640_s0] sm:$0xff]  ;;  %v50_v54 = vlaneseq }
  0x27   :  { %461 = vset.pattern.permute.xlu0 %v541_v0  ;;  %462 = vset.pattern.permute.xlu1 %v542_v1  ;;  %v89_v4 = vld [vmem:[#allocation2] sm:$0xff]  ;;  %v90_v5 = vld [vmem:[#allocation2 + $0x8] sm:$0xff]  ;;  %vm52_vm0 = vcmp.ge.s32.totalorder %v49_v3, 0  ;;  %vm53_vm1 = vcmp.lt.s32.totalorder %v49_v3, 30  ;;  %v65_v6 = vadd.s32 30, %v49_v3  ;;  %v91_v7 = vld [vmem:[#allocation2 + $0x10] sm:$0xff] }
  0x28   :  { %401 = vmatprep.subr.bf16.mxu0 %v543_v2  ;;  %425 = vmatprep.subr.bf16.mxu1 %v543_v2  ;;  %v92_v8 = vld [vmem:[#allocation2 + $0x18] sm:$0xff]  ;;  %vm54_vm2 = vmand %vm52_vm0, %vm53_vm1  ;;  %v402_v9 = vpack.c.bf16 %v90_v5, %v89_v4  ;;  %v93_v12 = vld [vmem:[#allocation2 + $0x20] sm:$0xff]  ;;  %v76_v14 = vadd.s32 60, %v49_v3  ;;  %v544_v16 = vmov 2   ;;  %vm545_vm3 = vmmov 0   ;;  %s548_s22 = smov [#allocation7]  }
  0x29   :  { %56 = vperm.xlu0 %461, %v49_v3   ;;  %v59_v10 = vsel %vm54_vm2, 1, %v541_v0  ;;  %67 = vperm.xlu1 %462, %v65_v6   ;;  %v405_v11 = vpack.c.bf16 %v92_v8, %v91_v7  ;;  %v94_v13 = vld [vmem:[#allocation2 + $0x28] sm:$0xff]  ;;  %v95_v17 = vld [vmem:[#allocation2 + $0x30] sm:$0xff]  ;;  %v96_v18 = vld [vmem:[#allocation2 + $0x38] sm:$0xff]  ;;  %v546_v22 = vmov 0.0   ;;  %v51_v57 = vand.u32 127, %v50_v54 }
  0x2a   :  { %403 = vmatpush3.bf16.msra.mxu0 %v402_v9  ;;  %v408_v15 = vpack.c.bf16 %v94_v13, %v93_v12  ;;  %v411_v19 = vpack.c.bf16 %v96_v18, %v95_v17  ;;  %v97_v20 = vld [vmem:[#allocation2 + $0x40] sm:$0xff]  ;;  %v98_v21 = vld [vmem:[#allocation2 + $0x48] sm:$0xff]  ;;  %363 = vmatprep.mubr.msk.f32.mxu0 %vm545_vm3, %v546_v22  ;;  %v185_v25 = vld [vmem:[#allocation5 + $0x10] sm:$0xff]  ;;  %v547_v62 = vmov 1.0   ;;  %s283_s23 = sshll.u32 %s548_s22, 4  ;;  %s284_s23 = int_to_ptr.vmem [resolvable:$true] %s283_s23 }
  0x2b   :  { %404 = vmatprep.subr.bf16.mxu0 %v543_v2  ;;  %398 = vmatprep.mubr.msk.f32.mxu1 %vm545_vm3, %v546_v22  ;;  %v183_v23 = vld [vmem:[#allocation5] sm:$0xff]  ;;  %v184_v24 = vld [vmem:[#allocation5 + $0x8] sm:$0xff]  ;;  %v414_v26 = vpack.c.bf16 %v98_v21, %v97_v20  ;;  %v186_v28 = vld [vmem:[#allocation5 + $0x18] sm:$0xff]  ;;  %s509_s24 = scalar_lea.vmem %s284_s23, 128  ;;  %p514_p3 = scmp.lt.s32.totalorder %s284_s23, %s284_s23 }
  0x2c   :  { %v426_v27 = vpack.c.bf16 %v184_v24, %v183_v23  ;;  %v99_v29 = vld [vmem:[#allocation2 + $0x50] sm:$0xff]  ;;  %v100_v30 = vld [vmem:[#allocation2 + $0x58] sm:$0xff]  ;;  %v429_v31 = vpack.c.bf16 %v186_v28, %v185_v25  ;;  %v187_v32 = vld [vmem:[#allocation5 + $0x20] sm:$0xff]  ;;  %p510_p2 = scmp.ne.s32.totalorder %s284_s23, %s509_s24  ;;  %p515_p4 = scmp.lt.s32.totalorder %s509_s24, %s509_s24 }
  0x2d   :  { %61 = vperm.xlu0 %461, %v59_v10   ;;  %71 = vperm.xlu1 %462, %v59_v10   ;;  %v188_v33 = vld [vmem:[#allocation5 + $0x28] sm:$0xff]  ;;  %v417_v34 = vpack.c.bf16 %v100_v30, %v99_v29  ;;  %v101_v35 = vld [vmem:[#allocation2 + $0x60] sm:$0xff]  ;;  %v189_v38 = vld [vmem:[#allocation5 + $0x30] sm:$0xff] }
  0x2e   :  { %406 = vmatpush3.bf16.msra.mxu0 %v405_v11  ;;  %427 = vmatpush3.bf16.msra.mxu1 %v426_v27  ;;  %v102_v36 = vld [vmem:[#allocation2 + $0x68] sm:$0xff]  ;;  %v432_v37 = vpack.c.bf16 %v188_v33, %v187_v32  ;;  %v190_v39 = vld [vmem:[#allocation5 + $0x38] sm:$0xff]  ;;  %v103_v41 = vld [vmem:[#allocation2 + $0x70] sm:$0xff]  ;;  %p516_p5 = por %p515_p4, %p514_p3 }
  0x2f   :  { %407 = vmatprep.subr.bf16.mxu0 %v543_v2  ;;  %428 = vmatprep.subr.bf16.mxu1 %v543_v2  ;;  %v420_v40 = vpack.c.bf16 %v102_v36, %v101_v35  ;;  %v104_v42 = vld [vmem:[#allocation2 + $0x78] sm:$0xff]  ;;  %v435_v43 = vpack.c.bf16 %v190_v39, %v189_v38  ;;  %v191_v44 = vld [vmem:[#allocation5 + $0x40] sm:$0xff]  ;;  %v192_v45 = vld [vmem:[#allocation5 + $0x48] sm:$0xff] }
  0x30   :  { %v423_v46 = vpack.c.bf16 %v104_v42, %v103_v41  ;;  %v438_v47 = vpack.c.bf16 %v192_v45, %v191_v44  ;;  %v193_v48 = vld [vmem:[#allocation5 + $0x50] sm:$0xff]  ;;  %v194_v49 = vld [vmem:[#allocation5 + $0x58] sm:$0xff]  ;;  %v195_v51 = vld [vmem:[#allocation5 + $0x60] sm:$0xff]  ;;  %p517_p6 = pnand %p516_p5, %p510_p2 }
  0x31   :  { %463 = vset.pattern.permute.xlu0 %v544_v16  ;;  %464 = vset.pattern.permute.xlu1 %v544_v16  ;;  %v441_v50 = vpack.c.bf16 %v194_v49, %v193_v48  ;;  %v196_v52 = vld [vmem:[#allocation5 + $0x68] sm:$0xff]  ;;  %v197_v63 = vld [vmem:[#allocation5 + $0x70] sm:$0xff]  ;;  %v198_v0 = vld [vmem:[#allocation5 + $0x78] sm:$0xff] }
  0x32   :  { %78 = vperm.xlu0 %463, %v76_v14   ;;  %82 = vperm.xlu1 %464, %v59_v10   ;;  %v444_v53 = vpack.c.bf16 %v196_v52, %v195_v51  ;;  %v447_v1 = vpack.c.bf16 %v198_v0, %v197_v63  ;;  %v296_v7 = vld [vmem:[%s644_s4] ss:$0 sm:$0xff] }
  0x33   :  { %409 = vmatpush3.bf16.msra.mxu0 %v408_v15  ;;  %430 = vmatpush3.bf16.msra.mxu1 %v429_v31 }
  0x34   :  { %410 = vmatprep.subr.bf16.mxu0 %v543_v2  ;;  %431 = vmatprep.subr.bf16.mxu1 %v543_v2 }
  0x37   :  { %412 = vmatpush3.bf16.msra.mxu0 %v411_v19  ;;  %433 = vmatpush3.bf16.msra.mxu1 %v432_v37 }
  0x38   :  { %413 = vmatprep.subr.bf16.mxu0 %v543_v2  ;;  %434 = vmatprep.subr.bf16.mxu1 %v543_v2 }
  0x3b   :  { %415 = vmatpush3.bf16.msra.mxu0 %v414_v26  ;;  %436 = vmatpush3.bf16.msra.mxu1 %v435_v43 }
  0x3c   :  { %416 = vmatprep.subr.bf16.mxu0 %v543_v2  ;;  %437 = vmatprep.subr.bf16.mxu1 %v543_v2 }
  0x3f   :  { %418 = vmatpush3.bf16.msra.mxu0 %v417_v34  ;;  %439 = vmatpush3.bf16.msra.mxu1 %v438_v47 }
  0x40   :  { %419 = vmatprep.subr.bf16.mxu0 %v543_v2  ;;  %440 = vmatprep.subr.bf16.mxu1 %v543_v2 }
  0x43   :  { %421 = vmatpush3.bf16.msra.mxu0 %v420_v40  ;;  %442 = vmatpush3.bf16.msra.mxu1 %v441_v50 }
  0x44   :  { %422 = vmatprep.subr.bf16.mxu0 %v543_v2  ;;  %443 = vmatprep.subr.bf16.mxu1 %v543_v2 }
  0x47   :  { %424 = vmatpush3.bf16.msra.mxu0 %v423_v46  ;;  %445 = vmatpush3.bf16.msra.mxu1 %v444_v53 }
  0x48   :  { %446 = vmatprep.subr.bf16.mxu1 %v543_v2  ;;  %v294_v2 = vld [vmem:[%s642_s2] ss:$0 sm:$0xff] }
  0x4b   :  { %448 = vmatpush3.bf16.msra.mxu1 %v447_v1 }
  0xa8   :  { %v57_v55 = vpop.permute.xlu0 %56  ;;  %v68_v56 = vpop.permute.xlu1 %67 }
  0xa9   :  { %vm69_vm5 = vcmp.eq.s32.totalorder %v51_v57, %v68_v56  ;;  %vm58_vm8 = vcmp.eq.s32.totalorder %v51_v57, %v57_v55 }
  0xac   :  { %v62_v58 = vpop.permute.xlu0 %61  ;;  %v72_v59 = vpop.permute.xlu1 %71 }
  0xad   :  { %vm73_vm4 = vcmp.eq.s32.totalorder %v72_v59, 1  ;;  %vm63_vm6 = vcmp.eq.s32.totalorder %v62_v58, 1 }
  0xae   :  { %vm74_vm7 = vmand %vm69_vm5, %vm73_vm4 }
  0xaf   :  { %vm64_vm10 = vmand %vm58_vm8, %vm63_vm6 }
  0xb0   :  { %vm75_vm11 = vmor %vm64_vm10, %vm74_vm7 }
  0xb1   :  { %v79_v60 = vpop.permute.xlu0 %78  ;;  %v83_v61 = vpop.permute.xlu1 %82 }
  0xb2   :  { %vm80_vm9 = vcmp.eq.s32.totalorder %v51_v57, %v79_v60  ;;  %vm84_vm12 = vcmp.eq.s32.totalorder %v83_v61, 1 }
  0xb3   :  { %vm85_vm13 = vmand %vm80_vm9, %vm84_vm12 }
  0xb4   :  { %vm86_vm14 = vmor %vm75_vm11, %vm85_vm13 }
  0xb5   :  { %364 = vmatmul.mubr.msk.f32.vlgmr.msra.gmra.mrb[0].mxu0 %vm86_vm14, %v547_v62 }
 0x188   :  { %v178_v3 = vpop.f32.mrb[0].mxu0 }
 0x189   :  { %v179_v4 = vadd.f32 %v294_v2, %v178_v3  ;;  %v365_v5 = vpop.f32.mrb[1].mxu0 }
 0x18b   :  { %v182_v6 = vmax.f32 %v179_v4, 0.0 }
 0x18d   :  { %399 = vmatmul.mubr.f32.vlgmr.msra.gmra.mrb[0].mxu1 %v182_v6 }
 0x260   :  { %v272_v8 = vpop.f32.mrb[0].mxu1 }
 0x261   :  { %v273_v9 = vadd.f32 %v296_v7, %v272_v8  ;;  %v400_v10 = vpop.f32.mrb[1].mxu1 }
 0x263   :  { %276 = vst [vmem:[#allocation7] sm:$0xff] %v273_v9 }
 0x264   :  { %520 = shalt.err (!%p517_p6)
}
 0x265   :  { %s521_s26 = scalar_lea.hbm %s645_s5, 128 }
 0x266   :  { %p522_p7 = scmp.ne.s32.totalorder %s645_s5, %s521_s26  ;;  %p525_p8 = scmp.lt.u32.totalorder %s521_s26, %s645_s5 }
 0x268   :  { %p527_p9 = pnand %p525_p8, %p522_p7 }
 0x26a   :  { %530 = shalt.err (!%p527_p9)
}
 0x26b   :  { %286 = dma.vmem_to_hbm [thread:$0]  %s284_s23, 128, %s645_s5, [#allocation4]  }
 0x26c   :  { %535 = dma.done.wait [#allocation4], 128  }
 0x26d   :  { %536 = vsyncadd [#allocation4], 4294967168 }
 0x26e   :  { %290 = vsyncpa [#allocation3], 1 }
 0x26f   :  { %291 = vsyncpa [#allocation6], 1 }
 0x270   :  { %292 = vsyncpa [#allocation4], 1 }

// kernel: tpu_custom_call.1
= control target key start
LH: loop header
LB: loop body
LE: loop exit
PB: predicated region body
PF: predicated region fallthrough
CT: control target
= control target key end

     0   :  { %10 = vsyncpa [#allocation3], 0  ;;  %s640_s0 = inlined_call_operand.vmem [shape: s32[8,3], index: 0, kind: input, shape index: {}]   ;;  %s641_s1 = inlined_call_operand.hbm [shape: f32[128,128], index: 1, kind: input, shape index: {}]   ;;  %s642_s2 = inlined_call_operand.vmem [shape: f32[1,128], index: 2, kind: input, shape index: {}]   ;;  %s643_s3 = inlined_call_operand.hbm [shape: f32[128,128], index: 3, kind: input, shape index: {}]   ;;  %s644_s4 = inlined_call_operand.vmem [shape: f32[1,128], index: 4, kind: input, shape index: {}]   ;;  %s645_s5 = inlined_call_operand.hbm [shape: f32[8,128], index: 5, kind: output, shape index: {}]  }
   0x1   :  { %11 = vsyncpa [#allocation6], 0 }
   0x2   :  { %12 = vsyncpa [#allocation4], 0  ;;  %s537_s18 = smov [#allocation2]   ;;  %s465_s22 = scalar_lea.hbm %s641_s1, 2048 }
   0x3   :  { %s20_s19 = sshll.u32 %s537_s18, 4  ;;  %p466_p0 = scmp.ne.s32.totalorder %s641_s1, %s465_s22  ;;  %s21_s19 = int_to_ptr.vmem [resolvable:$true] %s20_s19 }
   0x4   :  { %p469_p1 = scmp.lt.u32.totalorder %s465_s22, %s641_s1 }
   0x6   :  { %p471_p2 = pnand %p469_p1, %p466_p0 }
   0x8   :  { %474 = shalt.err (!%p471_p2)
}
   0x9   :  { %s475_s27 = scalar_lea.vmem %s21_s19, 2048  ;;  %p480_p4 = scmp.lt.s32.totalorder %s21_s19, %s21_s19 }
   0xa   :  { %p476_p3 = scmp.ne.s32.totalorder %s21_s19, %s475_s27  ;;  %p481_p5 = scmp.lt.s32.totalorder %s475_s27, %s475_s27 }
   0xc   :  { %p482_p6 = por %p481_p5, %p480_p4 }
   0xe   :  { %p483_p7 = pnand %p482_p6, %p476_p3 }
  0x10   :  { %486 = shalt.err (!%p483_p7)
}
  0x11   :  { %s538_s28 = smov 128   ;;  %s539_s29 = smov 8  }
  0x12   :  { %26 = dma.hbm_to_vmem [thread:$0]  %s641_s1, 2048, %s21_s19, [#allocation3], %s538_s28, %s538_s28, %s539_s29  }
  0x13   :  { %s540_s7 = smov [#allocation5]   ;;  %s487_s11 = scalar_lea.hbm %s643_s3, 2048 }
  0x14   :  { %s34_s8 = sshll.u32 %s540_s7, 4  ;;  %p488_p8 = scmp.ne.s32.totalorder %s643_s3, %s487_s11  ;;  %s35_s8 = int_to_ptr.vmem [resolvable:$true] %s34_s8 }
  0x15   :  { %p491_p9 = scmp.lt.u32.totalorder %s487_s11, %s643_s3 }
  0x17   :  { %p493_p10 = pnand %p491_p9, %p488_p8 }
  0x19   :  { %496 = shalt.err (!%p493_p10)
}
  0x1a   :  { %s497_s16 = scalar_lea.vmem %s35_s8, 2048  ;;  %p502_p12 = scmp.lt.s32.totalorder %s35_s8, %s35_s8 }
  0x1b   :  { %p498_p11 = scmp.ne.s32.totalorder %s35_s8, %s497_s16  ;;  %p503_p13 = scmp.lt.s32.totalorder %s497_s16, %s497_s16 }
  0x1d   :  { %p504_p0 = por %p503_p13, %p502_p12 }
  0x1f   :  { %p505_p1 = pnand %p504_p0, %p498_p11 }
  0x21   :  { %508 = shalt.err (!%p505_p1)
}
  0x22   :  { %40 = dma.hbm_to_vmem [thread:$0]  %s643_s3, 2048, %s35_s8, [#allocation6], %s538_s28, %s538_s28, %s539_s29  }
  0x23   :  { %531 = dma.done.wait [#allocation3], 2048  }
  0x24   :  { %532 = vsyncadd [#allocation3], 4294965248 }
  0x25   :  { %533 = dma.done.wait [#allocation6], 2048  }
  0x26   :  { %534 = vsyncadd [#allocation6], 4294965248  ;;  %v541_v0 = vmov 0   ;;  %v542_v1 = vmov 1   ;;  %v543_v2 = vmov 0.0|0.0   ;;  %v49_v3 = vld [vmem:[%s640_s0] sm:$0xff]  ;;  %v50_v54 = vlaneseq }
  0x27   :  { %461 = vset.pattern.permute.xlu0 %v541_v0  ;;  %462 = vset.pattern.permute.xlu1 %v542_v1  ;;  %v89_v4 = vld [vmem:[#allocation2] sm:$0xff]  ;;  %v90_v5 = vld [vmem:[#allocation2 + $0x8] sm:$0xff]  ;;  %vm52_vm0 = vcmp.ge.s32.totalorder %v49_v3, 0  ;;  %vm53_vm1 = vcmp.lt.s32.totalorder %v49_v3, 30  ;;  %v65_v6 = vadd.s32 30, %v49_v3  ;;  %v91_v7 = vld [vmem:[#allocation2 + $0x10] sm:$0xff] }
  0x28   :  { %401 = vmatprep.subr.bf16.mxu0 %v543_v2  ;;  %425 = vmatprep.subr.bf16.mxu1 %v543_v2  ;;  %v92_v8 = vld [vmem:[#allocation2 + $0x18] sm:$0xff]  ;;  %vm54_vm2 = vmand %vm52_vm0, %vm53_vm1  ;;  %v402_v9 = vpack.c.bf16 %v90_v5, %v89_v4  ;;  %v93_v12 = vld [vmem:[#allocation2 + $0x20] sm:$0xff]  ;;  %v76_v14 = vadd.s32 60, %v49_v3  ;;  %v544_v16 = vmov 2   ;;  %vm545_vm3 = vmmov 0   ;;  %s548_s22 = smov [#allocation7]  }
  0x29   :  { %56 = vperm.xlu0 %461, %v49_v3   ;;  %v59_v10 = vsel %vm54_vm2, 1, %v541_v0  ;;  %67 = vperm.xlu1 %462, %v65_v6   ;;  %v405_v11 = vpack.c.bf16 %v92_v8, %v91_v7  ;;  %v94_v13 = vld [vmem:[#allocation2 + $0x28] sm:$0xff]  ;;  %v95_v17 = vld [vmem:[#allocation2 + $0x30] sm:$0xff]  ;;  %v96_v18 = vld [vmem:[#allocation2 + $0x38] sm:$0xff]  ;;  %v546_v22 = vmov 0.0   ;;  %v51_v57 = vand.u32 127, %v50_v54 }
  0x2a   :  { %403 = vmatpush3.bf16.msra.mxu0 %v402_v9  ;;  %v408_v15 = vpack.c.bf16 %v94_v13, %v93_v12  ;;  %v411_v19 = vpack.c.bf16 %v96_v18, %v95_v17  ;;  %v97_v20 = vld [vmem:[#allocation2 + $0x40] sm:$0xff]  ;;  %v98_v21 = vld [vmem:[#allocation2 + $0x48] sm:$0xff]  ;;  %363 = vmatprep.mubr.msk.f32.mxu0 %vm545_vm3, %v546_v22  ;;  %v185_v25 = vld [vmem:[#allocation5 + $0x10] sm:$0xff]  ;;  %v547_v62 = vmov 1.0   ;;  %s283_s23 = sshll.u32 %s548_s22, 4  ;;  %s284_s23 = int_to_ptr.vmem [resolvable:$true] %s283_s23 }
  0x2b   :  { %404 = vmatprep.subr.bf16.mxu0 %v543_v2  ;;  %398 = vmatprep.mubr.msk.f32.mxu1 %vm545_vm3, %v546_v22  ;;  %v183_v23 = vld [vmem:[#allocation5] sm:$0xff]  ;;  %v184_v24 = vld [vmem:[#allocation5 + $0x8] sm:$0xff]  ;;  %v414_v26 = vpack.c.bf16 %v98_v21, %v97_v20  ;;  %v186_v28 = vld [vmem:[#allocation5 + $0x18] sm:$0xff]  ;;  %s509_s24 = scalar_lea.vmem %s284_s23, 128  ;;  %p514_p3 = scmp.lt.s32.totalorder %s284_s23, %s284_s23 }
  0x2c   :  { %v426_v27 = vpack.c.bf16 %v184_v24, %v183_v23  ;;  %v99_v29 = vld [vmem:[#allocation2 + $0x50] sm:$0xff]  ;;  %v100_v30 = vld [vmem:[#allocation2 + $0x58] sm:$0xff]  ;;  %v429_v31 = vpack.c.bf16 %v186_v28, %v185_v25  ;;  %v187_v32 = vld [vmem:[#allocation5 + $0x20] sm:$0xff]  ;;  %p510_p2 = scmp.ne.s32.totalorder %s284_s23, %s509_s24  ;;  %p515_p4 = scmp.lt.s32.totalorder %s509_s24, %s509_s24 }
  0x2d   :  { %61 = vperm.xlu0 %461, %v59_v10   ;;  %71 = vperm.xlu1 %462, %v59_v10   ;;  %v188_v33 = vld [vmem:[#allocation5 + $0x28] sm:$0xff]  ;;  %v417_v34 = vpack.c.bf16 %v100_v30, %v99_v29  ;;  %v101_v35 = vld [vmem:[#allocation2 + $0x60] sm:$0xff]  ;;  %v189_v38 = vld [vmem:[#allocation5 + $0x30] sm:$0xff] }
  0x2e   :  { %406 = vmatpush3.bf16.msra.mxu0 %v405_v11  ;;  %427 = vmatpush3.bf16.msra.mxu1 %v426_v27  ;;  %v102_v36 = vld [vmem:[#allocation2 + $0x68] sm:$0xff]  ;;  %v432_v37 = vpack.c.bf16 %v188_v33, %v187_v32  ;;  %v190_v39 = vld [vmem:[#allocation5 + $0x38] sm:$0xff]  ;;  %v103_v41 = vld [vmem:[#allocation2 + $0x70] sm:$0xff]  ;;  %p516_p5 = por %p515_p4, %p514_p3 }
  0x2f   :  { %407 = vmatprep.subr.bf16.mxu0 %v543_v2  ;;  %428 = vmatprep.subr.bf16.mxu1 %v543_v2  ;;  %v420_v40 = vpack.c.bf16 %v102_v36, %v101_v35  ;;  %v104_v42 = vld [vmem:[#allocation2 + $0x78] sm:$0xff]  ;;  %v435_v43 = vpack.c.bf16 %v190_v39, %v189_v38  ;;  %v191_v44 = vld [vmem:[#allocation5 + $0x40] sm:$0xff]  ;;  %v192_v45 = vld [vmem:[#allocation5 + $0x48] sm:$0xff] }
  0x30   :  { %v423_v46 = vpack.c.bf16 %v104_v42, %v103_v41  ;;  %v438_v47 = vpack.c.bf16 %v192_v45, %v191_v44  ;;  %v193_v48 = vld [vmem:[#allocation5 + $0x50] sm:$0xff]  ;;  %v194_v49 = vld [vmem:[#allocation5 + $0x58] sm:$0xff]  ;;  %v195_v51 = vld [vmem:[#allocation5 + $0x60] sm:$0xff]  ;;  %p517_p6 = pnand %p516_p5, %p510_p2 }
  0x31   :  { %463 = vset.pattern.permute.xlu0 %v544_v16  ;;  %464 = vset.pattern.permute.xlu1 %v544_v16  ;;  %v441_v50 = vpack.c.bf16 %v194_v49, %v193_v48  ;;  %v196_v52 = vld [vmem:[#allocation5 + $0x68] sm:$0xff]  ;;  %v197_v63 = vld [vmem:[#allocation5 + $0x70] sm:$0xff]  ;;  %v198_v0 = vld [vmem:[#allocation5 + $0x78] sm:$0xff] }
  0x32   :  { %78 = vperm.xlu0 %463, %v76_v14   ;;  %82 = vperm.xlu1 %464, %v59_v10   ;;  %v444_v53 = vpack.c.bf16 %v196_v52, %v195_v51  ;;  %v447_v1 = vpack.c.bf16 %v198_v0, %v197_v63  ;;  %v296_v7 = vld [vmem:[%s644_s4] ss:$0 sm:$0xff] }
  0x33   :  { %409 = vmatpush3.bf16.msra.mxu0 %v408_v15  ;;  %430 = vmatpush3.bf16.msra.mxu1 %v429_v31 }
  0x34   :  { %410 = vmatprep.subr.bf16.mxu0 %v543_v2  ;;  %431 = vmatprep.subr.bf16.mxu1 %v543_v2 }
  0x37   :  { %412 = vmatpush3.bf16.msra.mxu0 %v411_v19  ;;  %433 = vmatpush3.bf16.msra.mxu1 %v432_v37 }
  0x38   :  { %413 = vmatprep.subr.bf16.mxu0 %v543_v2  ;;  %434 = vmatprep.subr.bf16.mxu1 %v543_v2 }
  0x3b   :  { %415 = vmatpush3.bf16.msra.mxu0 %v414_v26  ;;  %436 = vmatpush3.bf16.msra.mxu1 %v435_v43 }
  0x3c   :  { %416 = vmatprep.subr.bf16.mxu0 %v543_v2  ;;  %437 = vmatprep.subr.bf16.mxu1 %v543_v2 }
  0x3f   :  { %418 = vmatpush3.bf16.msra.mxu0 %v417_v34  ;;  %439 = vmatpush3.bf16.msra.mxu1 %v438_v47 }
  0x40   :  { %419 = vmatprep.subr.bf16.mxu0 %v543_v2  ;;  %440 = vmatprep.subr.bf16.mxu1 %v543_v2 }
  0x43   :  { %421 = vmatpush3.bf16.msra.mxu0 %v420_v40  ;;  %442 = vmatpush3.bf16.msra.mxu1 %v441_v50 }
  0x44   :  { %422 = vmatprep.subr.bf16.mxu0 %v543_v2  ;;  %443 = vmatprep.subr.bf16.mxu1 %v543_v2 }
  0x47   :  { %424 = vmatpush3.bf16.msra.mxu0 %v423_v46  ;;  %445 = vmatpush3.bf16.msra.mxu1 %v444_v53 }
  0x48   :  { %446 = vmatprep.subr.bf16.mxu1 %v543_v2  ;;  %v294_v2 = vld [vmem:[%s642_s2] ss:$0 sm:$0xff] }
  0x4b   :  { %448 = vmatpush3.bf16.msra.mxu1 %v447_v1 }
  0xa8   :  { %v57_v55 = vpop.permute.xlu0 %56  ;;  %v68_v56 = vpop.permute.xlu1 %67 }
  0xa9   :  { %vm69_vm5 = vcmp.eq.s32.totalorder %v51_v57, %v68_v56  ;;  %vm58_vm8 = vcmp.eq.s32.totalorder %v51_v57, %v57_v55 }
  0xac   :  { %v62_v58 = vpop.permute.xlu0 %61  ;;  %v72_v59 = vpop.permute.xlu1 %71 }
  0xad   :  { %vm73_vm4 = vcmp.eq.s32.totalorder %v72_v59, 1  ;;  %vm63_vm6 = vcmp.eq.s32.totalorder %v62_v58, 1 }
  0xae   :  { %vm74_vm7 = vmand %vm69_vm5, %vm73_vm4 }
  0xaf   :  { %vm64_vm10 = vmand %vm58_vm8, %vm63_vm6 }
  0xb0   :  { %vm75_vm11 = vmor %vm64_vm10, %vm74_vm7 }
  0xb1   :  { %v79_v60 = vpop.permute.xlu0 %78  ;;  %v83_v61 = vpop.permute.xlu1 %82 }
  0xb2   :  { %vm80_vm9 = vcmp.eq.s32.totalorder %v51_v57, %v79_v60  ;;  %vm84_vm12 = vcmp.eq.s32.totalorder %v83_v61, 1 }
  0xb3   :  { %vm85_vm13 = vmand %vm80_vm9, %vm84_vm12 }
  0xb4   :  { %vm86_vm14 = vmor %vm75_vm11, %vm85_vm13 }
  0xb5   :  { %364 = vmatmul.mubr.msk.f32.vlgmr.msra.gmra.mrb[0].mxu0 %vm86_vm14, %v547_v62 }
 0x188   :  { %v178_v3 = vpop.f32.mrb[0].mxu0 }
 0x189   :  { %v179_v4 = vadd.f32 %v294_v2, %v178_v3  ;;  %v365_v5 = vpop.f32.mrb[1].mxu0 }
 0x18b   :  { %v182_v6 = vmax.f32 %v179_v4, 0.0 }
 0x18d   :  { %399 = vmatmul.mubr.f32.vlgmr.msra.gmra.mrb[0].mxu1 %v182_v6 }
 0x260   :  { %v272_v8 = vpop.f32.mrb[0].mxu1 }
 0x261   :  { %v273_v9 = vadd.f32 %v296_v7, %v272_v8  ;;  %v400_v10 = vpop.f32.mrb[1].mxu1 }
 0x263   :  { %276 = vst [vmem:[#allocation7] sm:$0xff] %v273_v9 }
 0x264   :  { %520 = shalt.err (!%p517_p6)
}
 0x265   :  { %s521_s26 = scalar_lea.hbm %s645_s5, 128 }
 0x266   :  { %p522_p7 = scmp.ne.s32.totalorder %s645_s5, %s521_s26  ;;  %p525_p8 = scmp.lt.u32.totalorder %s521_s26, %s645_s5 }
 0x268   :  { %p527_p9 = pnand %p525_p8, %p522_p7 }
 0x26a   :  { %530 = shalt.err (!%p527_p9)
}
 0x26b   :  { %286 = dma.vmem_to_hbm [thread:$0]  %s284_s23, 128, %s645_s5, [#allocation4]  }
 0x26c   :  { %535 = dma.done.wait [#allocation4], 128  }
 0x26d   :  { %536 = vsyncadd [#allocation4], 4294967168 }
 0x26e   :  { %290 = vsyncpa [#allocation3], 1 }
 0x26f   :  { %291 = vsyncpa [#allocation6], 1 }
 0x270   :  { %292 = vsyncpa [#allocation4], 1 }

</bundles_post_ra>
